<compile_context>
chip_gen: v5e
topology: v5e:2x2
jax: 0.10.0
libtpu: 0.0.40
codegen_flags: <defaults>
</compile_context>

<pallas_src>
import jax
import jax.numpy as jnp
from jax import lax
from jax.experimental import pallas as pl
from jax.experimental.pallas import tpu as pltpu


# ---------------------------------------------------------------------------
# Kernel
# ---------------------------------------------------------------------------
def _suq_diag_linear_kernel(xm_ref, xv_ref, w_ref, wv_ref, b_ref, bv_ref,
                            hm_ref, hv_ref, hm_acc, hv_acc):
    """One (i, j, k) grid step of the SUQ diagonal linear head.

    xm_ref, xv_ref : [tm, tk]  input mean / variance tile
    w_ref,  wv_ref : [tn, tk]  weight mean / variance tile (native [D_out, D_in] layout)
    b_ref,  bv_ref : [1, tn]   bias mean / variance tile (added only at k == last)
    hm_ref, hv_ref : [tm, tn]  output tiles (written only at k == last)
    hm_acc, hv_acc : [tm, tn]  f32 VMEM accumulators, resident across the K axis
    """
    k = pl.program_id(2)

    @pl.when(k == 0)
    def _():
        hm_acc[...] = jnp.zeros_like(hm_acc)
        hv_acc[...] = jnp.zeros_like(hv_acc)

    xm = xm_ref[...]
    xv = xv_ref[...]
    w = w_ref[...]
    wv = wv_ref[...]

    # Contract dim 1 of both operands ("nt" matmul): [tm, tk] x [tn, tk] -> [tm, tn].
    dn = (((1,), (1,)), ((), ()))

    # Mean:  x_mean @ W.T  (f32 accumulation on the MXU)
    hm_acc[...] += lax.dot_general(xm, w, dn, preferred_element_type=jnp.float32)

    # Variance:  x_var @ (W**2).T + (x_mean**2 + x_var) @ w_var.T
    # Squaring runs on otherwise-idle VALU slots; single accumulator RMW per step.
    hv_acc[...] += (
        lax.dot_general(xv, w * w, dn, preferred_element_type=jnp.float32)
        + lax.dot_general(xm * xm + xv, wv, dn, preferred_element_type=jnp.float32)
    )

    @pl.when(k == pl.num_programs(2) - 1)
    def _():
        hm_ref[...] = (hm_acc[...] + b_ref[...].astype(jnp.float32)).astype(hm_ref.dtype)
        hv_ref[...] = (hv_acc[...] + bv_ref[...].astype(jnp.float32)).astype(hv_ref.dtype)


# ---------------------------------------------------------------------------
# Tiling / padding helpers
# ---------------------------------------------------------------------------
def _round_up(x, m):
    return ((x + m - 1) // m) * m


def _choose_tile(padded_dim, quantum, preferred, min_blocks=1):
    """Largest tile that is a multiple of `quantum`, divides `padded_dim`,
    is <= `preferred`, and (when possible) leaves >= `min_blocks` blocks."""
    units = padded_dim // quantum
    cap = max(1, preferred // quantum)
    if min_blocks > 1 and units >= min_blocks:
        cap = min(cap, units // min_blocks)
    cap = max(1, min(cap, units))
    best = 1
    for d in range(1, units + 1):
        if units % d == 0 and d <= cap:
            best = d
    return best * quantum


def _pad_to(x, target_shape):
    pads = tuple((0, t - s) for s, t in zip(x.shape, target_shape))
    if all(p == (0, 0) for p in pads):
        return x
    return jnp.pad(x, pads)


# ---------------------------------------------------------------------------
# Wrapper
# ---------------------------------------------------------------------------
def suq_classifier_diag_forward(x_mean, x_var, weight, bias, w_var, b_var,
                                *, tm=256, tn=512, tk=512, weights_dtype=None):
    """SUQ diagonal classifier head forward.

    weight, w_var: [D_out, D_in]   bias, b_var: [D_out]
    x_mean, x_var: [B, D_in]
    weights_dtype: optional dtype (e.g. jnp.bfloat16) to stream weight/w_var from
                   HBM at half width; accumulation stays f32.
    returns (h_mean, h_var): [B, D_out] each.
    """
    B, D_in = x_mean.shape
    D_out = weight.shape[0]
    out_dtype = x_mean.dtype

    if weights_dtype is not None and weight.dtype != weights_dtype:
        weight = weight.astype(weights_dtype)
        w_var = w_var.astype(weights_dtype)

    # Pad to sublane/lane quanta: zeros are exact for this op (padded K contributes
    # nothing; padded M/N rows/cols are sliced off below).
    B_p = _round_up(max(B, 1), 8)
    K_p = _round_up(D_in, 128)
    N_p = _round_up(D_out, 128)

    xm_p = _pad_to(x_mean, (B_p, K_p))
    xv_p = _pad_to(x_var, (B_p, K_p))
    w_p = _pad_to(weight, (N_p, K_p))
    wv_p = _pad_to(w_var, (N_p, K_p))
    b_p = _pad_to(bias.reshape(1, D_out), (1, N_p))
    bv_p = _pad_to(b_var.reshape(1, D_out), (1, N_p))

    # Tile selection (divisors of the padded dims, capped by the preferred size).
    tm_ = _choose_tile(B_p, 8, tm)
    # v7x megacore: if M collapses to one block, guarantee >= 2 blocks along N.
    min_blocks_n = 2 if (B_p // tm_ < 2 and N_p >= 256) else 1
    tn_ = _choose_tile(N_p, 128, tn, min_blocks=min_blocks_n)
    tk_ = _choose_tile(K_p, 128, tk)
    grid = (B_p // tm_, N_p // tn_, K_p // tk_)

    x_bytes = jnp.dtype(xm_p.dtype).itemsize
    w_bytes = jnp.dtype(w_p.dtype).itemsize
    o_bytes = jnp.dtype(out_dtype).itemsize

    # Deliberate, tile-derived VMEM budget (double-buffered ins/outs + accumulators
    # + in-kernel temporaries), capped at v7x's 64 MiB physical VMEM.
    vmem_est = (
        2 * 2 * tm_ * tk_ * x_bytes            # x_mean, x_var (double-buffered)
        + 2 * 2 * tn_ * tk_ * w_bytes          # weight, w_var (double-buffered)
        + 2 * 2 * tn_ * 4                      # bias, b_var
        + 2 * 2 * tm_ * tn_ * o_bytes          # h_mean, h_var outputs
        + 2 * tm_ * tn_ * 4                    # f32 accumulators
        + (tm_ * tk_ + tn_ * tk_ + 2 * tm_ * tn_) * 4  # w*w, xm*xm+xv, dot temps
    )
    vmem_limit = int(min(64 << 20, max(16 << 20, int(1.5 * vmem_est))))

    cost = pl.CostEstimate(
        flops=6 * B_p * K_p * N_p,
        transcendentals=0,
        bytes_accessed=int(
            (xm_p.size + xv_p.size) * x_bytes
            + (w_p.size + wv_p.size) * w_bytes
            + (b_p.size + bv_p.size) * 4
            + 2 * B_p * N_p * o_bytes
        ),
    )

    out_shapes = (
        jax.ShapeDtypeStruct((B_p, N_p), out_dtype),
        jax.ShapeDtypeStruct((B_p, N_p), out_dtype),
    )

    fn = pl.pallas_call(
        _suq_diag_linear_kernel,
        out_shape=out_shapes,
        grid_spec=pltpu.PrefetchScalarGridSpec(
            num_scalar_prefetch=0,
            grid=grid,
            in_specs=[
                pl.BlockSpec((tm_, tk_), lambda i, j, k: (i, k)),  # x_mean
                pl.BlockSpec((tm_, tk_), lambda i, j, k: (i, k)),  # x_var
                pl.BlockSpec((tn_, tk_), lambda i, j, k: (j, k)),  # weight  [D_out, D_in]
                pl.BlockSpec((tn_, tk_), lambda i, j, k: (j, k)),  # w_var   [D_out, D_in]
                pl.BlockSpec((1, tn_), lambda i, j, k: (0, j)),    # bias
                pl.BlockSpec((1, tn_), lambda i, j, k: (0, j)),    # bias var
            ],
            out_specs=[
                pl.BlockSpec((tm_, tn_), lambda i, j, k: (i, j)),  # h_mean
                pl.BlockSpec((tm_, tn_), lambda i, j, k: (i, j)),  # h_var
            ],
            scratch_shapes=[
                pltpu.VMEM((tm_, tn_), jnp.float32),               # h_mean accumulator
                pltpu.VMEM((tm_, tn_), jnp.float32),               # h_var accumulator
            ],
        ),
        compiler_params=pltpu.CompilerParams(
            # M / N are independent (sharded across v7x's 2 TensorCores);
            # K is the reduction axis (accumulator resident).
            dimension_semantics=("parallel", "parallel", "arbitrary"),
            vmem_limit_bytes=vmem_limit,
        ),
        cost_estimate=cost,
    )
    hm_p, hv_p = fn(xm_p, xv_p, w_p, wv_p, b_p, bv_p)
    return hm_p[:B, :D_out], hv_p[:B, :D_out]


# ---------------------------------------------------------------------------
# Reference + test harness
# ---------------------------------------------------------------------------
def _reference(x_mean, x_var, weight, bias, w_var, b_var):
    h_mean = x_mean @ weight.T + bias
    h_var = (x_var @ (weight ** 2).T
             + (x_mean ** 2 + x_var) @ w_var.T
             + b_var)
    return h_mean, h_var


def _make_inputs(key, B, D_in, D_out):
    k1, k2, k3, k4, k5, k6 = jax.random.split(key, 6)
    weight = jax.random.normal(k1, (D_out, D_in), dtype=jnp.float32) * 0.1
    bias = jax.random.normal(k2, (D_out,), dtype=jnp.float32) * 0.05
    w_var = jax.nn.softplus(jax.random.normal(k3, (D_out, D_in), jnp.float32)) * 0.01
    b_var = jax.nn.softplus(jax.random.normal(k4, (D_out,), jnp.float32)) * 0.01
    x_mean = jax.random.normal(k5, (B, D_in), dtype=jnp.float32)
    x_var = jax.nn.softplus(jax.random.normal(k6, (B, D_in), jnp.float32)) * 0.1
    return x_mean, x_var, weight, bias, w_var, b_var


if __name__ == "__main__":
    key = jax.random.PRNGKey(0)
    k_small, k_tiled, k_bf16 = jax.random.split(key, 3)

    # 1) Tiny, non-aligned classifier shape (exercises wrapper padding + slicing).
    args = _make_inputs(k_small, B=4, D_in=40, D_out=10)
    hm, hv = suq_classifier_diag_forward(*args)
    jax.block_until_ready((hm, hv))
    rm, rv = _reference(*args)
    assert hm.shape == rm.shape and hv.shape == rv.shape
    assert jnp.allclose(hm, rm, atol=1e-5, rtol=1e-5)
    assert jnp.allclose(hv, rv, atol=1e-5, rtol=1e-5)
    assert bool(jnp.all(hv >= 0.0))

    # 2) Small multi-tile shape exercising the full (i, j, k) grid and the K-axis
    #    accumulator / pl.when init+finalize path.
    args = _make_inputs(k_tiled, B=16, D_in=256, D_out=384)
    hm, hv = suq_classifier_diag_forward(*args, tm=8, tn=128, tk=128)
    jax.block_until_ready((hm, hv))
    rm, rv = _reference(*args)
    assert jnp.allclose(hm, rm, atol=1e-4, rtol=1e-4)
    assert jnp.allclose(hv, rv, atol=1e-4, rtol=1e-4)
    assert bool(jnp.all(hv >= 0.0))

    # 3) bf16-weights bandwidth path (f32 accumulation): looser tolerance.
    args = _make_inputs(k_bf16, B=32, D_in=512, D_out=256)
    hm, hv = suq_classifier_diag_forward(*args, weights_dtype=jnp.bfloat16)
    jax.block_until_ready((hm, hv))
    rm, rv = _reference(*args)
    assert jnp.allclose(hm, rm, atol=3e-2, rtol=3e-2)
    assert jnp.allclose(hv, rv, atol=3e-2, rtol=3e-2)
    assert bool(jnp.all(hv >= 0.0))

    print("KERNEL_OK")
</pallas_src>

<mosaic_0001>
module attributes {stable_mosaic.version = 11 : i64} {
  func.func @_suq_diag_linear_kernel(%arg0: i32, %arg1: i32, %arg2: i32, %arg3: memref<8x128xf32, #tpu.memory_space<vmem>>, %arg4: memref<8x128xf32, #tpu.memory_space<vmem>>, %arg5: memref<128x128xf32, #tpu.memory_space<vmem>>, %arg6: memref<128x128xf32, #tpu.memory_space<vmem>>, %arg7: memref<1x128xf32, #tpu.memory_space<vmem>>, %arg8: memref<1x128xf32, #tpu.memory_space<vmem>>, %arg9: memref<8x128xf32, #tpu.memory_space<vmem>>, %arg10: memref<8x128xf32, #tpu.memory_space<vmem>>, %arg11: memref<8x128xf32, #tpu.memory_space<vmem>>, %arg12: memref<8x128xf32, #tpu.memory_space<vmem>>) attributes {dimension_semantics = [#tpu.dimension_semantics<parallel>, #tpu.dimension_semantics<parallel>, #tpu.dimension_semantics<arbitrary>], iteration_bounds = array<i64: 1, 1, 1>, scalar_prefetch = 0 : i64, scratch_operands = 2 : i64, tpu.core_type = #tpu.core_type<tc>, window_params = [{transform_indices = @transform_0, window_bounds = array<i64: 8, 128>}, {transform_indices = @transform_1, window_bounds = array<i64: 8, 128>}, {transform_indices = @transform_2, window_bounds = array<i64: 128, 128>}, {transform_indices = @transform_3, window_bounds = array<i64: 128, 128>}, {transform_indices = @transform_4, window_bounds = array<i64: 1, 128>}, {transform_indices = @transform_5, window_bounds = array<i64: 1, 128>}, {transform_indices = @transform_6, window_bounds = array<i64: 8, 128>}, {transform_indices = @transform_7, window_bounds = array<i64: 8, 128>}]} {
    %c0_i32 = arith.constant 0 : i32
    %0 = arith.cmpi eq, %arg2, %c0_i32 : i32
    %1 = arith.extui %0 : i1 to i32
    %c0_i32_0 = arith.constant 0 : i32
    %2 = arith.cmpi ne, %1, %c0_i32_0 : i32
    scf.if %2 {
      %cst_20 = arith.constant 0.000000e+00 : f32
      %23 = vector.broadcast %cst_20 : f32 to vector<8x128xf32>
      %c0_21 = arith.constant 0 : index
      %c0_22 = arith.constant 0 : index
      %24 = vector.load %arg11[%c0_21, %c0_22] : memref<8x128xf32, #tpu.memory_space<vmem>>, vector<8x128xf32>
      tpu.vector_store %arg11[%c0_21, %c0_22], %23 {strides = array<i32>} : memref<8x128xf32, #tpu.memory_space<vmem>>, vector<8x128xf32>,
      %cst_23 = arith.constant 0.000000e+00 : f32
      %25 = vector.broadcast %cst_23 : f32 to vector<8x128xf32>
      %c0_24 = arith.constant 0 : index
      %c0_25 = arith.constant 0 : index
      %26 = vector.load %arg12[%c0_24, %c0_25] : memref<8x128xf32, #tpu.memory_space<vmem>>, vector<8x128xf32>
      tpu.vector_store %arg12[%c0_24, %c0_25], %25 {strides = array<i32>} : memref<8x128xf32, #tpu.memory_space<vmem>>, vector<8x128xf32>,
    } else {
    }
    %c0 = arith.constant 0 : index
    %c0_1 = arith.constant 0 : index
    %3 = vector.load %arg3[%c0, %c0_1] : memref<8x128xf32, #tpu.memory_space<vmem>>, vector<8x128xf32>
    %c0_2 = arith.constant 0 : index
    %c0_3 = arith.constant 0 : index
    %4 = vector.load %arg4[%c0_2, %c0_3] : memref<8x128xf32, #tpu.memory_space<vmem>>, vector<8x128xf32>
    %c0_4 = arith.constant 0 : index
    %c0_5 = arith.constant 0 : index
    %5 = vector.load %arg5[%c0_4, %c0_5] : memref<128x128xf32, #tpu.memory_space<vmem>>, vector<128x128xf32>
    %c0_6 = arith.constant 0 : index
    %c0_7 = arith.constant 0 : index
    %6 = vector.load %arg6[%c0_6, %c0_7] : memref<128x128xf32, #tpu.memory_space<vmem>>, vector<128x128xf32>
    %c0_8 = arith.constant 0 : index
    %c0_9 = arith.constant 0 : index
    %7 = vector.load %arg11[%c0_8, %c0_9] : memref<8x128xf32, #tpu.memory_space<vmem>>, vector<8x128xf32>
    %cst = arith.constant dense<0.000000e+00> : vector<8x128xf32>
    %8 = tpu.matmul %3, %5, %cst {dimension_numbers = #tpu.dot_dimension_numbers<[1], [1], [0], [0], [0, 0, 1, 0], [], []>} : vector<8x128xf32>, vector<128x128xf32>, vector<8x128xf32> -> vector<8x128xf32>
    %9 = arith.addf %7, %8 : vector<8x128xf32>
    %c0_10 = arith.constant 0 : index
    %c0_11 = arith.constant 0 : index
    %10 = vector.load %arg11[%c0_10, %c0_11] : memref<8x128xf32, #tpu.memory_space<vmem>>, vector<8x128xf32>
    tpu.vector_store %arg11[%c0_10, %c0_11], %9 {strides = array<i32>} : memref<8x128xf32, #tpu.memory_space<vmem>>, vector<8x128xf32>,
    %c0_12 = arith.constant 0 : index
    %c0_13 = arith.constant 0 : index
    %11 = vector.load %arg12[%c0_12, %c0_13] : memref<8x128xf32, #tpu.memory_space<vmem>>, vector<8x128xf32>
    %12 = arith.mulf %5, %5 : vector<128x128xf32>
    %cst_14 = arith.constant dense<0.000000e+00> : vector<8x128xf32>
    %13 = tpu.matmul %4, %12, %cst_14 {dimension_numbers = #tpu.dot_dimension_numbers<[1], [1], [0], [0], [0, 0, 1, 0], [], []>} : vector<8x128xf32>, vector<128x128xf32>, vector<8x128xf32> -> vector<8x128xf32>
    %14 = arith.mulf %3, %3 : vector<8x128xf32>
    %15 = arith.addf %14, %4 : vector<8x128xf32>
    %cst_15 = arith.constant dense<0.000000e+00> : vector<8x128xf32>
    %16 = tpu.matmul %15, %6, %cst_15 {dimension_numbers = #tpu.dot_dimension_numbers<[1], [1], [0], [0], [0, 0, 1, 0], [], []>} : vector<8x128xf32>, vector<128x128xf32>, vector<8x128xf32> -> vector<8x128xf32>
    %17 = arith.addf %13, %16 : vector<8x128xf32>
    %18 = arith.addf %11, %17 : vector<8x128xf32>
    %c0_16 = arith.constant 0 : index
    %c0_17 = arith.constant 0 : index
    %19 = vector.load %arg12[%c0_16, %c0_17] : memref<8x128xf32, #tpu.memory_space<vmem>>, vector<8x128xf32>
    tpu.vector_store %arg12[%c0_16, %c0_17], %18 {strides = array<i32>} : memref<8x128xf32, #tpu.memory_space<vmem>>, vector<8x128xf32>,
    %c0_i32_18 = arith.constant 0 : i32
    %20 = arith.cmpi eq, %arg2, %c0_i32_18 : i32
    %21 = arith.extui %20 : i1 to i32
    %c0_i32_19 = arith.constant 0 : i32
    %22 = arith.cmpi ne, %21, %c0_i32_19 : i32
    scf.if %22 {
      %c0_20 = arith.constant 0 : index
      %c0_21 = arith.constant 0 : index
      %23 = vector.load %arg11[%c0_20, %c0_21] : memref<8x128xf32, #tpu.memory_space<vmem>>, vector<8x128xf32>
      %c0_22 = arith.constant 0 : index
      %c0_23 = arith.constant 0 : index
      %24 = vector.load %arg7[%c0_22, %c0_23] : memref<1x128xf32, #tpu.memory_space<vmem>>, vector<1x128xf32>
      %25 = vector.broadcast %24 : vector<1x128xf32> to vector<8x128xf32>
      %26 = arith.addf %23, %25 : vector<8x128xf32>
      %c0_24 = arith.constant 0 : index
      %c0_25 = arith.constant 0 : index
      %27 = vector.load %arg9[%c0_24, %c0_25] : memref<8x128xf32, #tpu.memory_space<vmem>>, vector<8x128xf32>
      tpu.vector_store %arg9[%c0_24, %c0_25], %26 {strides = array<i32>} : memref<8x128xf32, #tpu.memory_space<vmem>>, vector<8x128xf32>,
      %c0_26 = arith.constant 0 : index
      %c0_27 = arith.constant 0 : index
      %28 = vector.load %arg12[%c0_26, %c0_27] : memref<8x128xf32, #tpu.memory_space<vmem>>, vector<8x128xf32>
      %c0_28 = arith.constant 0 : index
      %c0_29 = arith.constant 0 : index
      %29 = vector.load %arg8[%c0_28, %c0_29] : memref<1x128xf32, #tpu.memory_space<vmem>>, vector<1x128xf32>
      %30 = vector.broadcast %29 : vector<1x128xf32> to vector<8x128xf32>
      %31 = arith.addf %28, %30 : vector<8x128xf32>
      %c0_30 = arith.constant 0 : index
      %c0_31 = arith.constant 0 : index
      %32 = vector.load %arg10[%c0_30, %c0_31] : memref<8x128xf32, #tpu.memory_space<vmem>>, vector<8x128xf32>
      tpu.vector_store %arg10[%c0_30, %c0_31], %31 {strides = array<i32>} : memref<8x128xf32, #tpu.memory_space<vmem>>, vector<8x128xf32>,
    } else {
    }
    return
  }
  func.func @transform_0(%arg0: i32, %arg1: i32, %arg2: i32) -> (i32, i32) {
    %c0_i32 = arith.constant 0 : i32
    return %arg0, %arg2 : i32, i32
  }
  func.func @transform_1(%arg0: i32, %arg1: i32, %arg2: i32) -> (i32, i32) {
    %c0_i32 = arith.constant 0 : i32
    return %arg0, %arg2 : i32, i32
  }
  func.func @transform_2(%arg0: i32, %arg1: i32, %arg2: i32) -> (i32, i32) {
    %c0_i32 = arith.constant 0 : i32
    return %arg1, %arg2 : i32, i32
  }
  func.func @transform_3(%arg0: i32, %arg1: i32, %arg2: i32) -> (i32, i32) {
    %c0_i32 = arith.constant 0 : i32
    return %arg1, %arg2 : i32, i32
  }
  func.func @transform_4(%arg0: i32, %arg1: i32, %arg2: i32) -> (i32, i32) {
    %c0_i32 = arith.constant 0 : i32
    %c0_i32_0 = arith.constant 0 : i32
    return %c0_i32, %arg1 : i32, i32
  }
  func.func @transform_5(%arg0: i32, %arg1: i32, %arg2: i32) -> (i32, i32) {
    %c0_i32 = arith.constant 0 : i32
    %c0_i32_0 = arith.constant 0 : i32
    return %c0_i32, %arg1 : i32, i32
  }
  func.func @transform_6(%arg0: i32, %arg1: i32, %arg2: i32) -> (i32, i32) {
    %c0_i32 = arith.constant 0 : i32
    return %arg0, %arg1 : i32, i32
  }
  func.func @transform_7(%arg0: i32, %arg1: i32, %arg2: i32) -> (i32, i32) {
    %c0_i32 = arith.constant 0 : i32
    return %arg0, %arg1 : i32, i32
  }
}

</mosaic_0001>

<bundles_post_ra>
// kernel: tpu_custom_call.1
= control target key start
LH: loop header
LB: loop body
LE: loop exit
PB: predicated region body
PF: predicated region fallthrough
CT: control target
= control target key end

     0   :  { %13 = vsyncpa [#allocation5], 0  ;;  %s498_s0 = inlined_call_operand.hbm [shape: f32[8,128], index: 0, kind: input, shape index: {}]   ;;  %s499_s1 = inlined_call_operand.hbm [shape: f32[8,128], index: 1, kind: input, shape index: {}]   ;;  %s500_s2 = inlined_call_operand.hbm [shape: f32[128,128], index: 2, kind: input, shape index: {}]   ;;  %s501_s3 = inlined_call_operand.hbm [shape: f32[128,128], index: 3, kind: input, shape index: {}]   ;;  %s502_s4 = inlined_call_operand.vmem [shape: f32[1,128], index: 4, kind: input, shape index: {}]   ;;  %s503_s5 = inlined_call_operand.vmem [shape: f32[1,128], index: 5, kind: input, shape index: {}]   ;;  %s504_s6 = inlined_call_operand.hbm [shape: f32[8,128], index: 6, kind: output, shape index: {0}]   ;;  %s505_s7 = inlined_call_operand.hbm [shape: f32[8,128], index: 7, kind: output, shape index: {1}]  }
   0x1   :  { %14 = vsyncpa [#allocation8], 0 }
   0x2   :  { %15 = vsyncpa [#allocation11], 0 }
   0x3   :  { %16 = vsyncpa [#allocation6], 0  ;;  %s34_s26 = sshll.u32 %s499_s1, 4  ;;  %s35_s26 = int_to_ptr.hbm [resolvable:$true] %s34_s26 }
   0x4   :  { %17 = vsyncpa [#allocation14], 0  ;;  %s426_s27 = smov [#allocation7]   ;;  %s23_s8 = sshll.u32 %s498_s0, 4  ;;  %s24_s8 = int_to_ptr.hbm [resolvable:$true] %s23_s8 }
   0x5   :  { %s36_s28 = sshll.u32 %s426_s27, 4  ;;  %s427_s9 = smov [#allocation4]   ;;  %s37_s28 = int_to_ptr.vmem [resolvable:$true] %s36_s28 }
   0x6   :  { %39 = dma.hbm_to_vmem [thread:$0]  %s35_s26, 128, %s37_s28, [#allocation8]  }
   0x7   :  { %s25_s10 = sshll.u32 %s427_s9, 4  ;;  %s44_s13 = sshll.u32 %s500_s2, 4  ;;  %s26_s10 = int_to_ptr.vmem [resolvable:$true] %s25_s10  ;;  %s45_s13 = int_to_ptr.hbm [resolvable:$true] %s44_s13 }
   0x8   :  { %28 = dma.hbm_to_vmem [thread:$0]  %s24_s8, 128, %s26_s10, [#allocation5]  }
   0x9   :  { %s428_s1 = smov [#allocation9]   ;;  %s57_s17 = sshll.u32 %s501_s3, 4  ;;  %s58_s17 = int_to_ptr.hbm [resolvable:$true] %s57_s17 }
   0xa   :  { %s46_s14 = sshll.u32 %s428_s1, 4  ;;  %s429_s18 = smov 128   ;;  %s47_s14 = int_to_ptr.vmem [resolvable:$true] %s46_s14 }
   0xb   :  { %s430_s0 = smov 8   ;;  %s431_s19 = smov [#allocation10]  }
   0xc   :  { %52 = dma.hbm_to_vmem [thread:$0]  %s45_s13, 2048, %s47_s14, [#allocation8], %s429_s18, %s429_s18, %s430_s0  }
   0xd   :  { %s59_s20 = sshll.u32 %s431_s19, 4  ;;  %s60_s20 = int_to_ptr.vmem [resolvable:$true] %s59_s20 }
   0xe   :  { %65 = dma.hbm_to_vmem [thread:$0]  %s58_s17, 2048, %s60_s20, [#allocation11], %s429_s18, %s429_s18, %s430_s0  }
   0xf   :  { %416 = dma.done.wait [#allocation5], 128  }
  0x10   :  { %417 = vsyncadd [#allocation5], 4294967168 }
  0x11   :  { %418 = dma.done.wait [#allocation8], 2176  }
  0x12   :  { %419 = vsyncadd [#allocation8], 4294965120 }
  0x13   :  { %420 = dma.done.wait [#allocation11], 2048  }
  0x14   :  { %421 = vsyncadd [#allocation11], 4294965248  ;;  %v109_v0 = vld [vmem:[#allocation9 + $0x78] sm:$0xff]  ;;  %v108_v1 = vld [vmem:[#allocation9 + $0x70] sm:$0xff]  ;;  %s432_s21 = smov [#allocation12]   ;;  %s234_s25 = sshll.u32 %s504_s6, 4  ;;  %s235_s25 = int_to_ptr.hbm [resolvable:$true] %s234_s25 }
  0x15   :  { %v125_v2 = vld [vmem:[#allocation10 + $0x78] sm:$0xff]  ;;  %v165_v3 = vmul.f32 %v109_v0, %v109_v0  ;;  %127 = vmatpush.xpose.msra.mxu0 %v109_v0  ;;  %v124_v4 = vld [vmem:[#allocation10 + $0x70] sm:$0xff]  ;;  %v164_v5 = vmul.f32 %v108_v1, %v108_v1  ;;  %v107_v6 = vld [vmem:[#allocation9 + $0x68] sm:$0xff]  ;;  %s232_s22 = sshll.u32 %s432_s21, 4  ;;  %s433_s28 = smov [#allocation13]   ;;  %s233_s22 = int_to_ptr.vmem [resolvable:$true] %s232_s22 }
  0x16   :  { %168 = vmatpush.xpose.msra.mxu1 %v125_v2  ;;  %v123_v7 = vld [vmem:[#allocation10 + $0x68] sm:$0xff]  ;;  %v163_v8 = vmul.f32 %v107_v6, %v107_v6  ;;  %v106_v9 = vld [vmem:[#allocation9 + $0x60] sm:$0xff]  ;;  %v105_v12 = vld [vmem:[#allocation9 + $0x58] sm:$0xff]  ;;  %s245_s8 = sshll.u32 %s505_s7, 4  ;;  %s246_s8 = int_to_ptr.hbm [resolvable:$true] %s245_s8 }
  0x17   :  { %188 = vmatpush.xpose.msra.mxu2 %v165_v3  ;;  %v122_v10 = vld [vmem:[#allocation10 + $0x60] sm:$0xff]  ;;  %v162_v11 = vmul.f32 %v106_v9, %v106_v9  ;;  %v121_v13 = vld [vmem:[#allocation10 + $0x58] sm:$0xff]  ;;  %v161_v14 = vmul.f32 %v105_v12, %v105_v12  ;;  %v104_v15 = vld [vmem:[#allocation9 + $0x50] sm:$0xff] }
  0x18   :  { %v120_v16 = vld [vmem:[#allocation10 + $0x50] sm:$0xff]  ;;  %v160_v17 = vmul.f32 %v104_v15, %v104_v15  ;;  %v103_v18 = vld [vmem:[#allocation9 + $0x48] sm:$0xff]  ;;  %v102_v21 = vld [vmem:[#allocation9 + $0x40] sm:$0xff] }
  0x19   :  { %128 = vmatpush.xpose.msra.mxu0 %v108_v1  ;;  %v119_v19 = vld [vmem:[#allocation10 + $0x48] sm:$0xff]  ;;  %v159_v20 = vmul.f32 %v103_v18, %v103_v18  ;;  %v118_v22 = vld [vmem:[#allocation10 + $0x40] sm:$0xff]  ;;  %v158_v23 = vmul.f32 %v102_v21, %v102_v21  ;;  %v101_v24 = vld [vmem:[#allocation9 + $0x38] sm:$0xff] }
  0x1a   :  { %169 = vmatpush.xpose.msra.mxu1 %v124_v4  ;;  %v117_v25 = vld [vmem:[#allocation10 + $0x38] sm:$0xff]  ;;  %v157_v26 = vmul.f32 %v101_v24, %v101_v24  ;;  %v100_v27 = vld [vmem:[#allocation9 + $0x30] sm:$0xff]  ;;  %v99_v30 = vld [vmem:[#allocation9 + $0x28] sm:$0xff] }
  0x1b   :  { %189 = vmatpush.xpose.msra.mxu2 %v164_v5  ;;  %v116_v28 = vld [vmem:[#allocation10 + $0x30] sm:$0xff]  ;;  %v156_v29 = vmul.f32 %v100_v27, %v100_v27  ;;  %v115_v31 = vld [vmem:[#allocation10 + $0x28] sm:$0xff]  ;;  %v155_v32 = vmul.f32 %v99_v30, %v99_v30  ;;  %v98_v33 = vld [vmem:[#allocation9 + $0x20] sm:$0xff] }
  0x1c   :  { %v114_v34 = vld [vmem:[#allocation10 + $0x20] sm:$0xff]  ;;  %v154_v35 = vmul.f32 %v98_v33, %v98_v33  ;;  %v97_v36 = vld [vmem:[#allocation9 + $0x18] sm:$0xff]  ;;  %v96_v39 = vld [vmem:[#allocation9 + $0x10] sm:$0xff] }
  0x1d   :  { %129 = vmatpush.xpose.msra.mxu0 %v107_v6  ;;  %v113_v37 = vld [vmem:[#allocation10 + $0x18] sm:$0xff]  ;;  %v153_v38 = vmul.f32 %v97_v36, %v97_v36  ;;  %v112_v40 = vld [vmem:[#allocation10 + $0x10] sm:$0xff]  ;;  %v152_v41 = vmul.f32 %v96_v39, %v96_v39  ;;  %v95_v42 = vld [vmem:[#allocation9 + $0x8] sm:$0xff] }
  0x1e   :  { %170 = vmatpush.xpose.msra.mxu1 %v123_v7  ;;  %v92_v43 = vld [vmem:[#allocation4] sm:$0xff]  ;;  %v111_v44 = vld [vmem:[#allocation10 + $0x8] sm:$0xff]  ;;  %v151_v45 = vmul.f32 %v95_v42, %v95_v42  ;;  %v94_v46 = vld [vmem:[#allocation9] sm:$0xff] }
  0x1f   :  { %190 = vmatpush.xpose.msra.mxu2 %v163_v8  ;;  %v166_v47 = vmul.f32 %v92_v43, %v92_v43  ;;  %v110_v48 = vld [vmem:[#allocation10] sm:$0xff]  ;;  %v150_v49 = vmul.f32 %v94_v46, %v94_v46  ;;  %v93_v50 = vld [vmem:[#allocation7] sm:$0xff]  ;;  %v271_v52 = vld [vmem:[%s502_s4] ss:$0 sm:$0xff]  ;;  %s243_s4 = sshll.u32 %s433_s28, 4  ;;  %s244_s4 = int_to_ptr.vmem [resolvable:$true] %s243_s4 }
  0x20   :  { %v270_v56 = vld [vmem:[%s503_s5] ss:$0 sm:$0xff] }
  0x21   :  { %130 = vmatpush.xpose.msra.mxu0 %v106_v9  ;;  %v167_v51 = vadd.f32 %v166_v47, %v93_v50 }
  0x22   :  { %171 = vmatpush.xpose.msra.mxu1 %v122_v10 }
  0x23   :  { %191 = vmatpush.xpose.msra.mxu2 %v162_v11 }
  0x25   :  { %131 = vmatpush.xpose.msra.mxu0 %v105_v12 }
  0x26   :  { %172 = vmatpush.xpose.msra.mxu1 %v121_v13 }
  0x27   :  { %192 = vmatpush.xpose.msra.mxu2 %v161_v14 }
  0x29   :  { %132 = vmatpush.xpose.msra.mxu0 %v104_v15 }
  0x2a   :  { %173 = vmatpush.xpose.msra.mxu1 %v120_v16 }
  0x2b   :  { %193 = vmatpush.xpose.msra.mxu2 %v160_v17 }
  0x2d   :  { %133 = vmatpush.xpose.msra.mxu0 %v103_v18 }
  0x2e   :  { %174 = vmatpush.xpose.msra.mxu1 %v119_v19 }
  0x2f   :  { %194 = vmatpush.xpose.msra.mxu2 %v159_v20 }
  0x31   :  { %134 = vmatpush.xpose.msra.mxu0 %v102_v21 }
  0x32   :  { %175 = vmatpush.xpose.msra.mxu1 %v118_v22 }
  0x33   :  { %195 = vmatpush.xpose.msra.mxu2 %v158_v23 }
  0x35   :  { %135 = vmatpush.xpose.msra.mxu0 %v101_v24 }
  0x36   :  { %176 = vmatpush.xpose.msra.mxu1 %v117_v25 }
  0x37   :  { %196 = vmatpush.xpose.msra.mxu2 %v157_v26 }
  0x39   :  { %136 = vmatpush.xpose.msra.mxu0 %v100_v27 }
  0x3a   :  { %177 = vmatpush.xpose.msra.mxu1 %v116_v28 }
  0x3b   :  { %197 = vmatpush.xpose.msra.mxu2 %v156_v29 }
  0x3d   :  { %137 = vmatpush.xpose.msra.mxu0 %v99_v30 }
  0x3e   :  { %178 = vmatpush.xpose.msra.mxu1 %v115_v31 }
  0x3f   :  { %198 = vmatpush.xpose.msra.mxu2 %v155_v32 }
  0x41   :  { %138 = vmatpush.xpose.msra.mxu0 %v98_v33 }
  0x42   :  { %179 = vmatpush.xpose.msra.mxu1 %v114_v34 }
  0x43   :  { %199 = vmatpush.xpose.msra.mxu2 %v154_v35 }
  0x45   :  { %139 = vmatpush.xpose.msra.mxu0 %v97_v36 }
  0x46   :  { %180 = vmatpush.xpose.msra.mxu1 %v113_v37 }
  0x47   :  { %200 = vmatpush.xpose.msra.mxu2 %v153_v38 }
  0x49   :  { %140 = vmatpush.xpose.msra.mxu0 %v96_v39 }
  0x4a   :  { %181 = vmatpush.xpose.msra.mxu1 %v112_v40 }
  0x4b   :  { %201 = vmatpush.xpose.msra.mxu2 %v152_v41 }
  0x4d   :  { %141 = vmatpush.xpose.msra.mxu0 %v95_v42 }
  0x4e   :  { %182 = vmatpush.xpose.msra.mxu1 %v111_v44 }
  0x4f   :  { %202 = vmatpush.xpose.msra.mxu2 %v151_v45 }
  0x51   :  { %142 = vmatpush.xpose.msra.mxu0 %v94_v46 }
  0x52   :  { %183 = vmatpush.xpose.msra.mxu1 %v110_v48 }
  0x53   :  { %203 = vmatpush.xpose.msra.mxu2 %v150_v49 }
  0x54   :  { %143 = vmatmul.f32.vlgmr.msra.gmra.mxu0 %v92_v43 }
  0x55   :  { %184 = vmatmul.f32.vlgmr.msra.gmra.mxu1 %v167_v51 }
  0x56   :  { %204 = vmatmul.f32.vlgmr.msra.gmra.mxu2 %v93_v50 }
  0xd1   :  { %v144_v53 = vpop.f32.mrf.mxu0 }
  0xd2   :  { %v218_v54 = vadd.f32 %v271_v52, %v144_v53  ;;  %v185_v55 = vpop.f32.mrf.mxu1 }
  0xd4   :  { %219 = vst [vmem:[#allocation12] sm:$0xff] %v218_v54 }
  0xd5   :  { %237 = dma.vmem_to_hbm [thread:$0]  %s233_s22, 128, %s235_s25, [#allocation6]  }
  0xd9   :  { %v205_v57 = vpop.f32.mrf.mxu2 }
  0xda   :  { %v206_v58 = vadd.f32 %v205_v57, %v185_v55 }
  0xdc   :  { %v225_v59 = vadd.f32 %v270_v56, %v206_v58 }
  0xde   :  { %226 = vst [vmem:[#allocation13] sm:$0xff] %v225_v59 }
  0xdf   :  { %248 = dma.vmem_to_hbm [thread:$0]  %s244_s4, 128, %s246_s8, [#allocation14]  }
  0xe0   :  { %422 = dma.done.wait [#allocation6], 128  }
  0xe1   :  { %423 = vsyncadd [#allocation6], 4294967168 }
  0xe2   :  { %424 = dma.done.wait [#allocation14], 128  }
  0xe3   :  { %425 = vsyncadd [#allocation14], 4294967168 }
  0xe4   :  { %257 = vsyncpa [#allocation5], 1 }
  0xe5   :  { %258 = vsyncpa [#allocation8], 1 }
  0xe6   :  { %259 = vsyncpa [#allocation11], 1 }
  0xe7   :  { %260 = vsyncpa [#allocation6], 1 }
  0xe8   :  { %261 = vsyncpa [#allocation14], 1 }

</bundles_post_ra>
